<compile_context>
chip_gen: v6e
topology: v6e:2x2x1
jax: 0.10.0
libtpu: 0.0.40
codegen_flags: <defaults>
</compile_context>

<pallas_src>
import functools

import jax
import jax.numpy as jnp
from jax import lax
from jax.experimental import pallas as pl
from jax.experimental.pallas import tpu as pltpu

EPS = 1e-5  # PyTorch BatchNorm1d default eps
_VMEM_LIMIT_BYTES = 48 * 1024 * 1024  # above 16/32 MiB scoped defaults, < 64 MiB v7x physical


def _round_up(x, m):
    return ((x + m - 1) // m) * m


def _pad_cast_2d(a, rows, cols, dtype):
    """Zero-pad a 2D array to (rows, cols) and cast; skip the copy when already aligned."""
    a = a.astype(dtype)
    if a.shape == (rows, cols):
        return a
    return jnp.zeros((rows, cols), dtype).at[: a.shape[0], : a.shape[1]].set(a)


def _stats_kernel(x_ref, w1_ref, stats_ref):
    """Pass 1: per-column sum / sum-of-squares of g = x @ W1 for one batch tile.

    The bias is excluded so zero-padded batch rows contribute exactly zero
    (no masking needed), and the stats are bias-shifted for better f32 stability.
    The (2, hidden) accumulator stays VMEM-resident across the 'arbitrary' axis.
    """
    @pl.when(pl.program_id(1) == 0)
    def _():
        stats_ref[...] = jnp.zeros_like(stats_ref)

    g = jnp.dot(x_ref[...], w1_ref[...], preferred_element_type=jnp.float32)
    stats_ref[0:1, :] += jnp.sum(g, axis=0, keepdims=True)
    stats_ref[1:2, :] += jnp.sum(g * g, axis=0, keepdims=True)


def _fwd_kernel(x_ref, w1_ref, scale_ref, shift_ref, w2_ref, b2_ref, o_ref):
    """Pass 2: recompute g = x @ W1 (cheap, K = dim), folded BN + ReLU, then W2."""
    g = jnp.dot(x_ref[...], w1_ref[...], preferred_element_type=jnp.float32)
    a = jnp.maximum(g * scale_ref[...] + shift_ref[...], 0.0)
    out = jnp.dot(a.astype(jnp.bfloat16), w2_ref[...],
                  preferred_element_type=jnp.float32)
    o_ref[...] = out + b2_ref[...]


def pad_params(w1, b1, gamma, beta, w2, b2):
    """Pad / cast the MLP parameters once (call OUTSIDE the jitted forward)."""
    dim, hidden = w1.shape
    proj = w2.shape[1]
    hidden_p = _round_up(hidden, 128)
    proj_p = _round_up(proj, 128)
    f32, bf16 = jnp.float32, jnp.bfloat16
    w1_p = _pad_cast_2d(w1, dim, hidden_p, bf16)
    b1_p = _pad_cast_2d(jnp.reshape(b1, (1, -1)), 1, hidden_p, f32)
    gamma_p = _pad_cast_2d(jnp.reshape(gamma, (1, -1)), 1, hidden_p, f32)
    beta_p = _pad_cast_2d(jnp.reshape(beta, (1, -1)), 1, hidden_p, f32)
    w2_p = _pad_cast_2d(w2, hidden_p, proj_p, bf16)
    b2_p = _pad_cast_2d(jnp.reshape(b2, (1, -1)), 1, proj_p, f32)
    return w1_p, b1_p, gamma_p, beta_p, w2_p, b2_p


def mlp_forward(x, w1_p, b1_p, gamma_p, beta_p, w2_p, b2_p, *, proj, tile_b=None):
    """Train-mode forward of Linear -> BatchNorm1d -> ReLU -> Linear.

    Note: under train-mode BatchNorm the first Linear's bias cancels exactly
    (mean subtraction), so b1_p is accepted for API parity but unused.
    """
    del b1_p  # cancels under batch normalization (train mode)
    B, dim = x.shape
    hidden_p = w1_p.shape[1]
    proj_p = w2_p.shape[1]
    f32, bf16 = jnp.float32, jnp.bfloat16

    # Batch tiling: big tiles amortize per-grid-step overhead; with h never
    # materialized the per-tile VMEM footprint stays small even at 512 rows.
    if tile_b is None:
        tile_b = min(512, _round_up(B, 8))
    b_p = _round_up(B, tile_b)
    num_tiles = b_p // tile_b

    # Leading "parallel" core axis so pass 1 can use both v7x TensorCores
    # (per-core partial stats, summed below). No effect on v5e/v6e.
    nc = 2 if (num_tiles >= 2 and num_tiles % 2 == 0) else 1
    tpc = num_tiles // nc

    x_p = x.astype(bf16)
    if b_p != B:
        x_p = jnp.zeros((b_p, dim), bf16).at[:B, :].set(x_p)

    # ---- pass 1: streaming per-column sum / sum(g^2), g = x @ W1 -------------
    p1_cost = pl.CostEstimate(
        flops=2 * b_p * dim * hidden_p,
        transcendentals=0,
        bytes_accessed=x_p.size * 2 + w1_p.size * 2 + nc * 2 * hidden_p * 4,
    )
    partial = pl.pallas_call(
        _stats_kernel,
        grid=(nc, tpc),
        in_specs=[
            pl.BlockSpec((tile_b, dim), lambda c, i: (c * tpc + i, 0)),
            pl.BlockSpec((dim, hidden_p), lambda c, i: (0, 0)),
        ],
        out_specs=pl.BlockSpec((None, 2, hidden_p), lambda c, i: (c, 0, 0)),
        out_shape=jax.ShapeDtypeStruct((nc, 2, hidden_p), f32),
        compiler_params=pltpu.CompilerParams(
            dimension_semantics=("parallel", "arbitrary"),
            vmem_limit_bytes=_VMEM_LIMIT_BYTES),
        cost_estimate=p1_cost,
    )(x_p, w1_p)

    # ---- fold BN once into scale/shift (tiny 2 x hidden op, outside the tiles)
    sums = jnp.sum(partial, axis=0)                       # (2, hidden_p)
    mean_g = sums[0:1, :] * (1.0 / B)
    var = jnp.maximum(sums[1:2, :] * (1.0 / B) - mean_g * mean_g, 0.0)
    scale = gamma_p * lax.rsqrt(var + EPS)
    # (h - mean_h) * scale + beta  ==  g * scale + (beta - mean_g * scale)
    shift = beta_p - mean_g * scale

    # ---- pass 2: recompute g, folded BN + ReLU, second matmul ----------------
    p2_cost = pl.CostEstimate(
        flops=2 * b_p * dim * hidden_p + 2 * b_p * hidden_p * proj_p
        + 3 * b_p * hidden_p,
        transcendentals=0,
        bytes_accessed=(x_p.size * 2 + w1_p.size * 2 + 2 * hidden_p * 4
                        + w2_p.size * 2 + proj_p * 4 + b_p * proj_p * 4),
    )
    out_p = pl.pallas_call(
        _fwd_kernel,
        grid=(num_tiles,),
        in_specs=[
            pl.BlockSpec((tile_b, dim), lambda i: (i, 0)),
            pl.BlockSpec((dim, hidden_p), lambda i: (0, 0)),
            pl.BlockSpec((1, hidden_p), lambda i: (0, 0)),
            pl.BlockSpec((1, hidden_p), lambda i: (0, 0)),
            pl.BlockSpec((hidden_p, proj_p), lambda i: (0, 0)),
            pl.BlockSpec((1, proj_p), lambda i: (0, 0)),
        ],
        out_specs=pl.BlockSpec((tile_b, proj_p), lambda i: (i, 0)),
        out_shape=jax.ShapeDtypeStruct((b_p, proj_p), f32),
        compiler_params=pltpu.CompilerParams(
            dimension_semantics=("parallel",),
            vmem_limit_bytes=_VMEM_LIMIT_BYTES),
        cost_estimate=p2_cost,
    )(x_p, w1_p, scale, shift, w2_p, b2_p)

    return out_p[:B, :proj]


def init_params(key, dim, hidden, proj):
    """Deterministic init mimicking PyTorch nn.Linear defaults (U(+/- 1/sqrt(fan_in)))."""
    k1, k2, k3, k4 = jax.random.split(key, 4)
    bound1 = 1.0 / jnp.sqrt(dim)
    bound2 = 1.0 / jnp.sqrt(hidden)
    # Weights stored pre-transposed: (in_features, out_features)
    w1 = jax.random.uniform(k1, (dim, hidden), jnp.float32, -bound1, bound1)
    b1 = jax.random.uniform(k2, (1, hidden), jnp.float32, -bound1, bound1)
    w2 = jax.random.uniform(k3, (hidden, proj), jnp.float32, -bound2, bound2)
    b2 = jax.random.uniform(k4, (1, proj), jnp.float32, -bound2, bound2)
    # BatchNorm1d affine params of a fresh module: gamma=1, beta=0
    gamma = jnp.ones((1, hidden), jnp.float32)
    beta = jnp.zeros((1, hidden), jnp.float32)
    return w1, b1, gamma, beta, w2, b2


def mlp_reference(x, w1, b1, gamma, beta, w2, b2, *, matmul_dtype=jnp.bfloat16):
    """Pure-JAX reference; matmul_dtype=bf16 matches the kernel's MXU dtypes."""
    def mm(a, b):
        return jnp.dot(a.astype(matmul_dtype), b.astype(matmul_dtype),
                       preferred_element_type=jnp.float32)
    h = mm(x, w1) + b1
    mean = jnp.mean(h, axis=0, keepdims=True)
    var = jnp.mean(jnp.square(h - mean), axis=0, keepdims=True)  # biased, like PT train mode
    h = (h - mean) * lax.rsqrt(var + EPS) * gamma + beta
    h = jnp.maximum(h, 0.0)
    return mm(h, w2) + b2


if __name__ == "__main__":
    # Small shapes consistent with the module: MLP(dim=32, projection_size=64, hidden_size=128)
    B, dim, hidden, proj = 8, 32, 128, 64

    key = jax.random.PRNGKey(0)
    kx, kp = jax.random.split(key)
    x = jax.random.normal(kx, (B, dim), jnp.float32)
    params = init_params(kp, dim, hidden, proj)

    padded = pad_params(*params)  # one-time pad/cast, outside the jitted forward
    fwd = jax.jit(functools.partial(mlp_forward, proj=proj))
    out = jax.block_until_ready(fwd(x, *padded))
    assert out.shape == (B, proj)

    # Tight check vs a reference using identical MXU dtypes (bf16 in, f32 accum).
    ref_bf16 = mlp_reference(x, *params)
    assert jnp.allclose(out, ref_bf16, atol=5e-3, rtol=5e-3), "mismatch vs bf16-matched reference"

    # Loose check vs the full-f32 math of the original module.
    ref_f32 = mlp_reference(x, *params, matmul_dtype=jnp.float32)
    assert jnp.allclose(out, ref_f32, atol=1e-1, rtol=1e-1), "mismatch vs f32 reference"

    print("KERNEL_OK")
</pallas_src>

<mosaic_0001>
module attributes {stable_mosaic.version = 11 : i64} {
  func.func @_stats_kernel(%arg0: i32, %arg1: i32, %arg2: memref<8x32xbf16, #tpu.memory_space<vmem>>, %arg3: memref<32x128xbf16, #tpu.memory_space<vmem>>, %arg4: memref<1x2x128xf32, #tpu.memory_space<vmem>>) attributes {dimension_semantics = [#tpu.dimension_semantics<parallel>, #tpu.dimension_semantics<arbitrary>], iteration_bounds = array<i64: 1, 1>, scalar_prefetch = 0 : i64, scratch_operands = 0 : i64, tpu.core_type = #tpu.core_type<tc>, window_params = [{transform_indices = @transform_0, window_bounds = array<i64: 8, 32>}, {pipeline_mode = #tpu.pipeline_mode<synchronous>, transform_indices = @transform_1, window_bounds = array<i64: 32, 128>}, {transform_indices = @transform_2, window_bounds = array<i64: 1, 2, 128>}]} {
    %c0_i32 = arith.constant 0 : i32
    %0 = arith.cmpi eq, %arg1, %c0_i32 : i32
    %1 = arith.extui %0 : i1 to i32
    %c0_i32_0 = arith.constant 0 : i32
    %2 = arith.cmpi ne, %1, %c0_i32_0 : i32
    scf.if %2 {
      %cst_17 = arith.constant 0.000000e+00 : f32
      %23 = vector.broadcast %cst_17 : f32 to vector<2x128xf32>
      %c0_18 = arith.constant 0 : index
      %c0_19 = arith.constant 0 : index
      %c0_20 = arith.constant 0 : index
      %24 = vector.load %arg4[%c0_18, %c0_19, %c0_20] : memref<1x2x128xf32, #tpu.memory_space<vmem>>, vector<1x2x128xf32>
      %25 = vector.shape_cast %24 : vector<1x2x128xf32> to vector<2x128xf32>
      %26 = vector.shape_cast %23 : vector<2x128xf32> to vector<1x2x128xf32>
      tpu.vector_store %arg4[%c0_18, %c0_19, %c0_20], %26 {strides = array<i32>} : memref<1x2x128xf32, #tpu.memory_space<vmem>>, vector<1x2x128xf32>,
    } else {
    }
    %c0 = arith.constant 0 : index
    %c0_1 = arith.constant 0 : index
    %3 = vector.load %arg2[%c0, %c0_1] : memref<8x32xbf16, #tpu.memory_space<vmem>>, vector<8x32xbf16>
    %c0_2 = arith.constant 0 : index
    %c0_3 = arith.constant 0 : index
    %4 = vector.load %arg3[%c0_2, %c0_3] : memref<32x128xbf16, #tpu.memory_space<vmem>>, vector<32x128xbf16>
    %cst = arith.constant dense<0.000000e+00> : vector<8x128xf32>
    %5 = tpu.matmul %3, %4, %cst {dimension_numbers = #tpu.dot_dimension_numbers<[1], [0], [0], [1], [0, 0, 1, 1], [], []>} : vector<8x32xbf16>, vector<32x128xbf16>, vector<8x128xf32> -> vector<8x128xf32>
    %c0_4 = arith.constant 0 : index
    %c0_5 = arith.constant 0 : index
    %c0_6 = arith.constant 0 : index
    %6 = vector.load %arg4[%c0_4, %c0_5, %c0_6] : memref<1x2x128xf32, #tpu.memory_space<vmem>>, vector<1x1x128xf32>
    %7 = vector.shape_cast %6 : vector<1x1x128xf32> to vector<1x128xf32>
    %cst_7 = arith.constant dense<0.000000e+00> : vector<128xf32>
    %8 = vector.multi_reduction <add>, %5, %cst_7 [0] : vector<8x128xf32> to vector<128xf32>
    %9 = vector.shape_cast %8 : vector<128xf32> to vector<1x128xf32>
    %10 = arith.addf %7, %9 : vector<1x128xf32>
    %c0_8 = arith.constant 0 : index
    %c0_9 = arith.constant 0 : index
    %c0_10 = arith.constant 0 : index
    %11 = vector.load %arg4[%c0_8, %c0_9, %c0_10] : memref<1x2x128xf32, #tpu.memory_space<vmem>>, vector<1x1x128xf32>
    %12 = vector.shape_cast %11 : vector<1x1x128xf32> to vector<1x128xf32>
    %13 = vector.shape_cast %10 : vector<1x128xf32> to vector<1x1x128xf32>
    tpu.vector_store %arg4[%c0_8, %c0_9, %c0_10], %13 {strides = array<i32>} : memref<1x2x128xf32, #tpu.memory_space<vmem>>, vector<1x1x128xf32>,
    %c0_11 = arith.constant 0 : index
    %c1 = arith.constant 1 : index
    %c0_12 = arith.constant 0 : index
    %14 = vector.load %arg4[%c0_11, %c1, %c0_12] : memref<1x2x128xf32, #tpu.memory_space<vmem>>, vector<1x1x128xf32>
    %15 = vector.shape_cast %14 : vector<1x1x128xf32> to vector<1x128xf32>
    %16 = arith.mulf %5, %5 : vector<8x128xf32>
    %cst_13 = arith.constant dense<0.000000e+00> : vector<128xf32>
    %17 = vector.multi_reduction <add>, %16, %cst_13 [0] : vector<8x128xf32> to vector<128xf32>
    %18 = vector.shape_cast %17 : vector<128xf32> to vector<1x128xf32>
    %19 = arith.addf %15, %18 : vector<1x128xf32>
    %c0_14 = arith.constant 0 : index
    %c1_15 = arith.constant 1 : index
    %c0_16 = arith.constant 0 : index
    %20 = vector.load %arg4[%c0_14, %c1_15, %c0_16] : memref<1x2x128xf32, #tpu.memory_space<vmem>>, vector<1x1x128xf32>
    %21 = vector.shape_cast %20 : vector<1x1x128xf32> to vector<1x128xf32>
    %22 = vector.shape_cast %19 : vector<1x128xf32> to vector<1x1x128xf32>
    tpu.vector_store %arg4[%c0_14, %c1_15, %c0_16], %22 {strides = array<i32>} : memref<1x2x128xf32, #tpu.memory_space<vmem>>, vector<1x1x128xf32>,
    return
  }
  func.func @transform_0(%arg0: i32, %arg1: i32) -> (i32, i32) {
    %c1_i32 = arith.constant 1 : i32
    %0 = arith.muli %arg0, %c1_i32 : i32
    %1 = arith.addi %0, %arg1 : i32
    %c0_i32 = arith.constant 0 : i32
    %c0_i32_0 = arith.constant 0 : i32
    return %1, %c0_i32 : i32, i32
  }
  func.func @transform_1(%arg0: i32, %arg1: i32) -> (i32, i32) {
    %c0_i32 = arith.constant 0 : i32
    %c0_i32_0 = arith.constant 0 : i32
    %c0_i32_1 = arith.constant 0 : i32
    return %c0_i32, %c0_i32_0 : i32, i32
  }
  func.func @transform_2(%arg0: i32, %arg1: i32) -> (i32, i32, i32) {
    %c0_i32 = arith.constant 0 : i32
    %c0_i32_0 = arith.constant 0 : i32
    %c0_i32_1 = arith.constant 0 : i32
    return %arg0, %c0_i32, %c0_i32_0 : i32, i32, i32
  }
}

module attributes {stable_mosaic.version = 11 : i64} {
  func.func @_fwd_kernel(%arg0: i32, %arg1: memref<8x32xbf16, #tpu.memory_space<vmem>>, %arg2: memref<32x128xbf16, #tpu.memory_space<vmem>>, %arg3: memref<1x128xf32, #tpu.memory_space<vmem>>, %arg4: memref<1x128xf32, #tpu.memory_space<vmem>>, %arg5: memref<128x128xbf16, #tpu.memory_space<vmem>>, %arg6: memref<1x128xf32, #tpu.memory_space<vmem>>, %arg7: memref<8x128xf32, #tpu.memory_space<vmem>>) attributes {dimension_semantics = [#tpu.dimension_semantics<parallel>], iteration_bounds = array<i64: 1>, scalar_prefetch = 0 : i64, scratch_operands = 0 : i64, tpu.core_type = #tpu.core_type<tc>, window_params = [{transform_indices = @transform_0, window_bounds = array<i64: 8, 32>}, {pipeline_mode = #tpu.pipeline_mode<synchronous>, transform_indices = @transform_1, window_bounds = array<i64: 32, 128>}, {pipeline_mode = #tpu.pipeline_mode<synchronous>, transform_indices = @transform_2, window_bounds = array<i64: 1, 128>}, {pipeline_mode = #tpu.pipeline_mode<synchronous>, transform_indices = @transform_3, window_bounds = array<i64: 1, 128>}, {pipeline_mode = #tpu.pipeline_mode<synchronous>, transform_indices = @transform_4, window_bounds = array<i64: 128, 128>}, {pipeline_mode = #tpu.pipeline_mode<synchronous>, transform_indices = @transform_5, window_bounds = array<i64: 1, 128>}, {transform_indices = @transform_6, window_bounds = array<i64: 8, 128>}]} {
    %c0 = arith.constant 0 : index
    %c0_0 = arith.constant 0 : index
    %0 = vector.load %arg1[%c0, %c0_0] : memref<8x32xbf16, #tpu.memory_space<vmem>>, vector<8x32xbf16>
    %c0_1 = arith.constant 0 : index
    %c0_2 = arith.constant 0 : index
    %1 = vector.load %arg2[%c0_1, %c0_2] : memref<32x128xbf16, #tpu.memory_space<vmem>>, vector<32x128xbf16>
    %cst = arith.constant dense<0.000000e+00> : vector<8x128xf32>
    %2 = tpu.matmul %0, %1, %cst {dimension_numbers = #tpu.dot_dimension_numbers<[1], [0], [0], [1], [0, 0, 1, 1], [], []>} : vector<8x32xbf16>, vector<32x128xbf16>, vector<8x128xf32> -> vector<8x128xf32>
    %c0_3 = arith.constant 0 : index
    %c0_4 = arith.constant 0 : index
    %3 = vector.load %arg3[%c0_3, %c0_4] : memref<1x128xf32, #tpu.memory_space<vmem>>, vector<1x128xf32>
    %4 = vector.broadcast %3 : vector<1x128xf32> to vector<8x128xf32>
    %5 = arith.mulf %2, %4 : vector<8x128xf32>
    %c0_5 = arith.constant 0 : index
    %c0_6 = arith.constant 0 : index
    %6 = vector.load %arg4[%c0_5, %c0_6] : memref<1x128xf32, #tpu.memory_space<vmem>>, vector<1x128xf32>
    %7 = vector.broadcast %6 : vector<1x128xf32> to vector<8x128xf32>
    %8 = arith.addf %5, %7 : vector<8x128xf32>
    %cst_7 = arith.constant 0.000000e+00 : f32
    %9 = vector.broadcast %cst_7 : f32 to vector<8x128xf32>
    %10 = arith.maximumf %8, %9 : vector<8x128xf32>
    %11 = arith.truncf %10 : vector<8x128xf32> to vector<8x128xbf16>
    %c0_8 = arith.constant 0 : index
    %c0_9 = arith.constant 0 : index
    %12 = vector.load %arg5[%c0_8, %c0_9] : memref<128x128xbf16, #tpu.memory_space<vmem>>, vector<128x128xbf16>
    %cst_10 = arith.constant dense<0.000000e+00> : vector<8x128xf32>
    %13 = tpu.matmul %11, %12, %cst_10 {dimension_numbers = #tpu.dot_dimension_numbers<[1], [0], [0], [1], [0, 0, 1, 1], [], []>} : vector<8x128xbf16>, vector<128x128xbf16>, vector<8x128xf32> -> vector<8x128xf32>
    %c0_11 = arith.constant 0 : index
    %c0_12 = arith.constant 0 : index
    %14 = vector.load %arg6[%c0_11, %c0_12] : memref<1x128xf32, #tpu.memory_space<vmem>>, vector<1x128xf32>
    %15 = vector.broadcast %14 : vector<1x128xf32> to vector<8x128xf32>
    %16 = arith.addf %13, %15 : vector<8x128xf32>
    %c0_13 = arith.constant 0 : index
    %c0_14 = arith.constant 0 : index
    %17 = vector.load %arg7[%c0_13, %c0_14] : memref<8x128xf32, #tpu.memory_space<vmem>>, vector<8x128xf32>
    tpu.vector_store %arg7[%c0_13, %c0_14], %16 {strides = array<i32>} : memref<8x128xf32, #tpu.memory_space<vmem>>, vector<8x128xf32>,
    return
  }
  func.func @transform_0(%arg0: i32) -> (i32, i32) {
    %c0_i32 = arith.constant 0 : i32
    %c0_i32_0 = arith.constant 0 : i32
    return %arg0, %c0_i32 : i32, i32
  }
  func.func @transform_1(%arg0: i32) -> (i32, i32) {
    %c0_i32 = arith.constant 0 : i32
    %c0_i32_0 = arith.constant 0 : i32
    %c0_i32_1 = arith.constant 0 : i32
    return %c0_i32, %c0_i32_0 : i32, i32
  }
  func.func @transform_2(%arg0: i32) -> (i32, i32) {
    %c0_i32 = arith.constant 0 : i32
    %c0_i32_0 = arith.constant 0 : i32
    %c0_i32_1 = arith.constant 0 : i32
    return %c0_i32, %c0_i32_0 : i32, i32
  }
  func.func @transform_3(%arg0: i32) -> (i32, i32) {
    %c0_i32 = arith.constant 0 : i32
    %c0_i32_0 = arith.constant 0 : i32
    %c0_i32_1 = arith.constant 0 : i32
    return %c0_i32, %c0_i32_0 : i32, i32
  }
  func.func @transform_4(%arg0: i32) -> (i32, i32) {
    %c0_i32 = arith.constant 0 : i32
    %c0_i32_0 = arith.constant 0 : i32
    %c0_i32_1 = arith.constant 0 : i32
    return %c0_i32, %c0_i32_0 : i32, i32
  }
  func.func @transform_5(%arg0: i32) -> (i32, i32) {
    %c0_i32 = arith.constant 0 : i32
    %c0_i32_0 = arith.constant 0 : i32
    %c0_i32_1 = arith.constant 0 : i32
    return %c0_i32, %c0_i32_0 : i32, i32
  }
  func.func @transform_6(%arg0: i32) -> (i32, i32) {
    %c0_i32 = arith.constant 0 : i32
    %c0_i32_0 = arith.constant 0 : i32
    return %arg0, %c0_i32 : i32, i32
  }
}

</mosaic_0001>

<bundles_post_ra>
// kernel: mlp_forward.3
= control target key start
LH: loop header
LB: loop body
LE: loop exit
PB: predicated region body
PF: predicated region fallthrough
CT: control target
= control target key end

     0   :  { %11 = vsyncpa [#allocation3], 0  ;;  %s424_s0 = inlined_call_operand.vmem [shape: bf16[8,32], index: 0, kind: input, shape index: {}]   ;;  %s425_s1 = inlined_call_operand.vmem [shape: bf16[32,128], index: 1, kind: input, shape index: {}]   ;;  %s426_s2 = inlined_call_operand.vmem [shape: f32[1,128], index: 2, kind: input, shape index: {}]   ;;  %s427_s3 = inlined_call_operand.vmem [shape: f32[1,128], index: 3, kind: input, shape index: {}]   ;;  %s428_s4 = inlined_call_operand.hbm [shape: bf16[128,128], index: 4, kind: input, shape index: {}]   ;;  %s429_s5 = inlined_call_operand.vmem [shape: f32[1,128], index: 5, kind: input, shape index: {}]   ;;  %s430_s6 = inlined_call_operand.hbm [shape: f32[8,128], index: 6, kind: output, shape index: {}]  }
   0x1   :  { %12 = vsyncpa [#allocation4], 0  ;;  %s359_s21 = smov [#allocation2]  }
   0x2   :  { %s26_s22 = sshll.u32 %s359_s21, 4  ;;  %s27_s22 = int_to_ptr.vmem [resolvable:$true] %s26_s22 }
   0x3   :  { %s323_s23 = scalar_lea.vmem %s27_s22, 1024  ;;  %p328_p1 = scmp.lt.s32.totalorder %s27_s22, %s27_s22 }
   0x4   :  { %p324_p0 = scmp.ne.s32.totalorder %s27_s22, %s323_s23  ;;  %p329_p2 = scmp.lt.s32.totalorder %s323_s23, %s323_s23 }
   0x6   :  { %p330_p3 = por %p329_p2, %p328_p1 }
   0x8   :  { %p331_p4 = pnand %p330_p3, %p324_p0 }
   0xa   :  { %334 = shalt.err (!%p331_p4)
}
   0xb   :  { %s360_s24 = smov 64   ;;  %s361_s25 = smov 4  }
   0xc   :  { %32 = dma.hbm_to_vmem [thread:$0]  %s428_s4, 1024, %s27_s22, [#allocation3], %s360_s24, %s360_s24, %s361_s25  }
   0xd   :  { %355 = dma.done.wait [#allocation3], 1024  }
   0xe   :  { %356 = vsyncadd [#allocation3], 4294966272  ;;  %v362_v0 = vmov 0.0   ;;  %vm363_vm0 = vmmov 0   ;;  %v305_v1 = vld [vmem:[%s425_s1 + $0x8] sm:$0xff]   ;;  %v306_v2 = vld [vmem:[%s425_s1] sm:$0xff]  }
   0xf   :  { %271 = vmatprep.subr.bf16.mxu0 %v362_v0  ;;  %275 = vmatprep.mubr.msk.bf16.mxu0 %vm363_vm0, %v362_v0  ;;  %v307_v3 = vld [vmem:[#allocation2 + $0x38] sm:$0xff]   ;;  %vm56_vm1 = vcmask 261120   ;;  %v308_v4 = vld [vmem:[#allocation2 + $0x30] sm:$0xff]   ;;  %v309_v6 = vld [vmem:[#allocation2 + $0x28] sm:$0xff]   ;;  %s364_s13 = smov [#allocation5]  }
  0x10   :  { %279 = vmatprep.subr.bf16.mxu1 %v362_v0  ;;  %295 = vmatprep.mubr.msk.bf16.mxu1 %vm363_vm0, %v362_v0  ;;  %v39_v5 = vld [vmem:[%s424_s0] sm:$0xf]  ;;  %v310_v7 = vld [vmem:[#allocation2 + $0x20] sm:$0xff]   ;;  %v311_v8 = vld [vmem:[#allocation2 + $0x18] sm:$0xff]   ;;  %s236_s14 = sshll.u32 %s364_s13, 4  ;;  %s237_s14 = int_to_ptr.vmem [resolvable:$true] %s236_s14 }
  0x11   :  { %272 = vmatpush3.bf16.msra.mxu0 %v305_v1  ;;  %280 = vmatpush3.bf16.msra.mxu1 %v307_v3  ;;  %v312_v9 = vld [vmem:[#allocation2 + $0x10] sm:$0xff]   ;;  %v313_v10 = vld [vmem:[#allocation2 + $0x8] sm:$0xff]   ;;  %v314_v11 = vld [vmem:[#allocation2] sm:$0xff]   ;;  %p340_p6 = scmp.lt.s32.totalorder %s237_s14, %s237_s14 }
  0x12   :  { %273 = vmatprep.subr.bf16.mxu0 %v362_v0  ;;  %281 = vmatprep.subr.bf16.mxu1 %v362_v0  ;;  %v248_v12 = vld [vmem:[%s426_s2] ss:$0 sm:$0xff]  ;;  %s335_s2 = scalar_lea.vmem %s237_s14, 128 }
  0x13   :  { %v249_v14 = vld [vmem:[%s427_s3] ss:$0 sm:$0xff]  ;;  %p336_p5 = scmp.ne.s32.totalorder %s237_s14, %s335_s2  ;;  %p341_p7 = scmp.lt.s32.totalorder %s335_s2, %s335_s2 }
  0x14   :  { %v250_v22 = vld [vmem:[%s429_s5] ss:$0 sm:$0xff] }
  0x15   :  { %274 = vmatpush3.bf16.msra.mxu0 %v306_v2  ;;  %282 = vmatpush3.bf16.msra.mxu1 %v308_v4  ;;  %p342_p8 = por %p341_p7, %p340_p6 }
  0x16   :  { %283 = vmatprep.subr.bf16.mxu1 %v362_v0 }
  0x17   :  { %p343_p9 = pnand %p342_p8, %p336_p5 }
  0x18   :  { %276 = vmatmul.mubr.msk.bf16.vlgmr.msra.gmra.mxu0 %vm56_vm1, %v39_v5 }
  0x19   :  { %284 = vmatpush3.bf16.msra.mxu1 %v309_v6 }
  0x1a   :  { %285 = vmatprep.subr.bf16.mxu1 %v362_v0 }
  0x1d   :  { %286 = vmatpush3.bf16.msra.mxu1 %v310_v7 }
  0x1e   :  { %287 = vmatprep.subr.bf16.mxu1 %v362_v0 }
  0x21   :  { %288 = vmatpush3.bf16.msra.mxu1 %v311_v8 }
  0x22   :  { %289 = vmatprep.subr.bf16.mxu1 %v362_v0 }
  0x25   :  { %290 = vmatpush3.bf16.msra.mxu1 %v312_v9 }
  0x26   :  { %291 = vmatprep.subr.bf16.mxu1 %v362_v0 }
  0x29   :  { %292 = vmatpush3.bf16.msra.mxu1 %v313_v10 }
  0x2a   :  { %293 = vmatprep.subr.bf16.mxu1 %v362_v0 }
  0x2d   :  { %294 = vmatpush3.bf16.msra.mxu1 %v314_v11 }
  0xd8   :  { %v94_v13 = vpop.f32.mrf.mxu0 }
  0xd9   :  { %v107_v15 = vmul.f32 %v248_v12, %v94_v13 }
  0xda   :  { %v277_v16 = vpop.f32.mrf.mxu0 }
  0xdb   :  { %v115_v17 = vadd.f32 %v249_v14, %v107_v15 }
  0xdc   :  { %v97_v18 = vpop.f32.mrf.mxu0 }
  0xdd   :  { %v116_v19 = vmax.f32 %v115_v17, 0.0 }
  0xde   :  { %v278_v20 = vpop.f32.mrf.mxu0 }
  0xdf   :  { %v117_v21 = vpack.c.bf16 %v116_v19, %v116_v19 }
  0xe1   :  { %296 = vmatmul.mubr.bf16.vlgmr.msra.gmra.mxu1 %v117_v21 }
 0x1a1   :  { %v223_v23 = vpop.f32.mrf.mxu1 }
 0x1a2   :  { %v224_v24 = vadd.f32 %v250_v22, %v223_v23 }
 0x1a3   :  { %v297_v25 = vpop.f32.mrf.mxu1 }
 0x1a4   :  { %229 = vst [vmem:[#allocation5] sm:$0xff] %v224_v24 }
 0x1a5   :  { %v226_v26 = vpop.f32.mrf.mxu1 }
 0x1a6   :  { %346 = shalt.err (!%p343_p9)
}
 0x1a7   :  { %239 = dma.vmem_to_hbm [thread:$0]  %s237_s14, 128, %s430_s6, [#allocation4]   ;;  %v298_v27 = vpop.f32.mrf.mxu1 }
 0x1a8   :  { %357 = dma.done.wait [#allocation4], 128  }
 0x1a9   :  { %358 = vsyncadd [#allocation4], 4294967168 }
 0x1aa   :  { %243 = vsyncpa [#allocation3], 1 }
 0x1ab   :  { %244 = vsyncpa [#allocation4], 1 }

// kernel: mlp_forward.2
= control target key start
LH: loop header
LB: loop body
LE: loop exit
PB: predicated region body
PF: predicated region fallthrough
CT: control target
= control target key end

     0   :  { %v142_v0 = vmov 0.0   ;;  %vm143_vm0 = vmmov 0   ;;  %vm51_vm1 = vcmask 261120   ;;  %s183_s2 = inlined_call_operand.vmem [shape: f32[1,2,128], index: 2, kind: output, shape index: {}]   ;;  %s184_s1 = inlined_call_operand.vmem [shape: bf16[32,128], index: 1, kind: input, shape index: {}]   ;;  %s185_s0 = inlined_call_operand.vmem [shape: bf16[8,32], index: 0, kind: input, shape index: {}]  }
   0x1   :  { %33 = vst [vmem:[%s183_s2] sm:$0x3] %v142_v0  ;;  %130 = vmatprep.subr.bf16.mxu0 %v142_v0  ;;  %v140_v1 = vld [vmem:[%s184_s1 + $0x8] sm:$0xff]   ;;  %134 = vmatprep.mubr.msk.bf16.mxu0 %vm143_vm0, %v142_v0  ;;  %v141_v2 = vld [vmem:[%s184_s1] sm:$0xff]  }
   0x2   :  { %131 = vmatpush3.bf16.msra.mxu0 %v140_v1  ;;  %v34_v3 = vld [vmem:[%s185_s0] sm:$0xf] }
   0x3   :  { %132 = vmatprep.subr.bf16.mxu0 %v142_v0 }
   0x6   :  { %133 = vmatpush3.bf16.msra.mxu0 %v141_v2 }
   0x8   :  { %v95_v18 = vld [vmem:[%s183_s2] sm:$0x1]  ;;  %v104_v21 = vld [vmem:[%s183_s2 + $0x1] sm:$0x1] }
   0x9   :  { %135 = vmatmul.mubr.msk.bf16.vlgmr.msra.gmra.mxu0 %vm51_vm1, %v34_v3 }
  0xc9   :  { %v89_v4 = vpop.f32.mrf.mxu0 }
  0xca   :  { %v96_v5 = vrot.slane %v89_v4, 4  ;;  %v105_v6 = vmul.f32 %v89_v4, %v89_v4 }
  0xcb   :  { %v136_v7 = vpop.f32.mrf.mxu0 }
  0xcc   :  { %v97_v8 = vadd.f32 %v96_v5, %v89_v4  ;;  %v106_v9 = vrot.slane %v105_v6, 4 }
  0xcd   :  { %v92_v10 = vpop.f32.mrf.mxu0 }
  0xce   :  { %v98_v11 = vrot.slane %v97_v8, 2  ;;  %v107_v12 = vadd.f32 %v106_v9, %v105_v6 }
  0xcf   :  { %v137_v13 = vpop.f32.mrf.mxu0 }
  0xd0   :  { %v99_v14 = vadd.f32 %v98_v11, %v97_v8  ;;  %v108_v15 = vrot.slane %v107_v12, 2 }
  0xd2   :  { %v100_v16 = vrot.slane %v99_v14, 1  ;;  %v109_v17 = vadd.f32 %v108_v15, %v107_v12 }
  0xd4   :  { %v101_v19 = vadd.f32 %v100_v16, %v99_v14  ;;  %v110_v20 = vrot.slane %v109_v17, 1 }
  0xd6   :  { %v102_v22 = vadd.f32 %v101_v19, %v95_v18  ;;  %v111_v23 = vadd.f32 %v110_v20, %v109_v17 }
  0xd8   :  { %103 = vst [vmem:[%s183_s2] sm:$0x1] %v102_v22  ;;  %v112_v24 = vadd.f32 %v111_v23, %v104_v21 }
  0xda   :  { %113 = vst [vmem:[%s183_s2 + $0x1] sm:$0x1] %v112_v24 }

</bundles_post_ra>
